<compile_context>
chip_gen: v5e
topology: v5e:2x2
jax: 0.10.0
libtpu: 0.0.40
codegen_flags: <defaults>
</compile_context>

<pallas_src>
import math

import jax
import jax.numpy as jnp
from jax.experimental import pallas as pl
from jax.experimental.pallas import tpu as pltpu

NEG_SLOPE = 0.01          # PyTorch nn.LeakyReLU default
IN_DIM, IN_PAD, HID, OUT_DIM = 4, 8, 64, 1
LANES = 128


def _leaky_relu(x):
    # max(x, a*x) == where(x > 0, x, a*x) for 0 < a < 1; one fewer VALU op.
    return jnp.maximum(x, NEG_SLOPE * x)


def dqn_kernel(x_ref, w1_ref, b1_ref, w2_ref, b2_ref, w3_ref, b3_ref, o_ref):
    # Feature-major layout, batch on the 128-lane axis:
    #   x_ref : (8, TB)    w1_ref: (64, 8)   b1_ref: (64, 1)
    #   w2_ref: (64, 64)   b2_ref: (64, 1)
    #   w3_ref: (1, 64)    b3_ref: (1, 1)    o_ref : (1, TB)
    x = x_ref[...]

    # Layer 1 on the MXU (K padded 4->8 with zero columns in the wrapper).
    h1 = jnp.dot(w1_ref[...], x, preferred_element_type=jnp.float32)
    h1 = _leaky_relu(h1 + b1_ref[...])

    # Layer 2: the 64x64 MXU matmul; lane axis = batch tile.
    h2 = jnp.dot(w2_ref[...], h1.astype(w2_ref.dtype),
                 preferred_element_type=jnp.float32)
    h2 = _leaky_relu(h2 + b2_ref[...])

    # Layer 3 on the MXU as (1,64)x(64,TB); MXU slot has slack, VALU doesn't.
    out = jnp.dot(w3_ref[...], h2.astype(w3_ref.dtype),
                  preferred_element_type=jnp.float32)
    o_ref[...] = (out + b3_ref[...]).astype(o_ref.dtype)


def _round_up(n, m):
    return ((n + m - 1) // m) * m


def deep_q_network(x, params, *, max_tile=4096, param_dtype=jnp.float32):
    """Fused forward pass. x: (B, 4) float32 -> (B, 1) float32.

    params are in PyTorch Linear convention:
      w1 (64,4), b1 (64,), w2 (64,64), b2 (64,), w3 (1,64), b3 (1,).
    """
    w1, b1, w2, b2, w3, b3 = params
    B = x.shape[0]
    assert x.shape[1] == IN_DIM

    # Weight prep (tiny, host/XLA-side, once per call): pad K of layer 1 to 8,
    # reshape biases to feature-major columns.
    w1p = jnp.zeros((HID, IN_PAD), param_dtype).at[:, :IN_DIM].set(
        w1.astype(param_dtype))
    w2p = w2.astype(param_dtype)
    w3p = w3.astype(param_dtype)                     # (1, 64) PyTorch (out,in)
    b1c = b1.reshape(HID, 1).astype(jnp.float32)
    b2c = b2.reshape(HID, 1).astype(jnp.float32)
    b3c = b3.reshape(OUT_DIM, 1).astype(jnp.float32)

    # Batch tile: multiple of 128 (batch lives on the lane axis) so all vector
    # stores are unmasked.  Large tiles amortize the ~600-cycle grid-step
    # overhead; keep >= 2 grid steps when possible so v7x megacore sharding
    # of the "parallel" axis has something to split.
    TB = min(max_tile, _round_up(B, LANES))
    Bp = _round_up(B, TB)
    if Bp // TB < 2 and Bp >= 2 * LANES:
        TB = _round_up(Bp // 2, LANES)
        Bp = _round_up(B, TB)

    # Feature-major, lane-dense input: (8, Bp).
    # TODO(synk): for large B, have the producer hand over feature-major (8,B)
    # activations directly so this transpose+pad HBM pass disappears.
    xt = jnp.zeros((IN_PAD, Bp), param_dtype).at[:IN_DIM, :B].set(
        x.T.astype(param_dtype))

    weight_bytes = 4 * (w1p.size + b1c.size + w2p.size + b2c.size
                        + w3p.size + b3c.size)
    cost = pl.CostEstimate(
        flops=2 * Bp * (IN_PAD * HID + HID * HID + HID * OUT_DIM),
        transcendentals=0,
        bytes_accessed=4 * (IN_PAD + OUT_DIM) * Bp + weight_bytes,
    )

    out = pl.pallas_call(
        dqn_kernel,
        out_shape=jax.ShapeDtypeStruct((OUT_DIM, Bp), jnp.float32),
        grid=(Bp // TB,),
        in_specs=[
            pl.BlockSpec((IN_PAD, TB), lambda i: (0, i)),      # x tile (streamed)
            pl.BlockSpec((HID, IN_PAD), lambda i: (0, 0)),     # w1 (VMEM-resident)
            pl.BlockSpec((HID, 1), lambda i: (0, 0)),          # b1
            pl.BlockSpec((HID, HID), lambda i: (0, 0)),        # w2
            pl.BlockSpec((HID, 1), lambda i: (0, 0)),          # b2
            pl.BlockSpec((OUT_DIM, HID), lambda i: (0, 0)),    # w3
            pl.BlockSpec((OUT_DIM, 1), lambda i: (0, 0)),      # b3
        ],
        out_specs=pl.BlockSpec((OUT_DIM, TB), lambda i: (0, i)),
        compiler_params=pltpu.CompilerParams(
            dimension_semantics=("parallel",),
            vmem_limit_bytes=32 * 1024 * 1024,   # safe on v5e/v6e/v7x; ~5 MiB used @TB=4096
        ),
        cost_estimate=cost,
    )(xt, w1p, b1c, w2p, b2c, w3p, b3c)

    return out[:, :B].T  # (B, 1)


def xavier_uniform(key, fan_out, fan_in, dtype=jnp.float32):
    # PyTorch xavier_uniform_: bound = sqrt(6 / (fan_in + fan_out)).
    bound = math.sqrt(6.0 / (fan_in + fan_out))
    return jax.random.uniform(
        key, (fan_out, fan_in), dtype=dtype, minval=-bound, maxval=bound
    )


def init_params(key):
    # Exactly the PyTorch module's parameter shapes ((out, in) weights,
    # flat biases), so a torch checkpoint maps 1:1.
    k1, k2, k3 = jax.random.split(key, 3)
    w1 = xavier_uniform(k1, HID, IN_DIM)        # (64, 4)
    b1 = jnp.zeros((HID,), jnp.float32)
    w2 = xavier_uniform(k2, HID, HID)           # (64, 64)
    b2 = jnp.zeros((HID,), jnp.float32)
    w3 = xavier_uniform(k3, OUT_DIM, HID)       # (1, 64) == Linear(64,1).weight
    b3 = jnp.zeros((OUT_DIM,), jnp.float32)
    return (w1, b1, w2, b2, w3, b3)


def reference_forward(x, params):
    w1, b1, w2, b2, w3, b3 = params
    h = jax.nn.leaky_relu(x @ w1.T + b1, NEG_SLOPE)
    h = jax.nn.leaky_relu(h @ w2.T + b2, NEG_SLOPE)
    return h @ w3.T + b3


if __name__ == "__main__":
    key = jax.random.PRNGKey(0)
    k_params, k_x = jax.random.split(key)

    params = init_params(k_params)
    x = jax.random.normal(k_x, (8, 4), dtype=jnp.float32)  # batch=8, state_dim=4

    out = deep_q_network(x, params)
    out = jax.block_until_ready(out)

    ref = reference_forward(x, params)
    assert out.shape == (8, 1), out.shape
    assert jnp.allclose(out, ref, atol=1e-5, rtol=1e-5), (out, ref)

    print("KERNEL_OK")
</pallas_src>

<mosaic_0001>
module attributes {stable_mosaic.version = 11 : i64} {
  func.func @dqn_kernel(%arg0: i32, %arg1: memref<8x128xf32, #tpu.memory_space<vmem>>, %arg2: memref<64x8xf32, #tpu.memory_space<vmem>>, %arg3: memref<64x1xf32, #tpu.memory_space<vmem>>, %arg4: memref<64x64xf32, #tpu.memory_space<vmem>>, %arg5: memref<64x1xf32, #tpu.memory_space<vmem>>, %arg6: memref<1x64xf32, #tpu.memory_space<vmem>>, %arg7: memref<1x1xf32, #tpu.memory_space<vmem>>, %arg8: memref<1x128xf32, #tpu.memory_space<vmem>>) attributes {dimension_semantics = [#tpu.dimension_semantics<parallel>], iteration_bounds = array<i64: 1>, scalar_prefetch = 0 : i64, scratch_operands = 0 : i64, tpu.core_type = #tpu.core_type<tc>, window_params = [{transform_indices = @transform_0, window_bounds = array<i64: 8, 128>}, {pipeline_mode = #tpu.pipeline_mode<synchronous>, transform_indices = @transform_1, window_bounds = array<i64: 64, 8>}, {pipeline_mode = #tpu.pipeline_mode<synchronous>, transform_indices = @transform_2, window_bounds = array<i64: 64, 1>}, {pipeline_mode = #tpu.pipeline_mode<synchronous>, transform_indices = @transform_3, window_bounds = array<i64: 64, 64>}, {pipeline_mode = #tpu.pipeline_mode<synchronous>, transform_indices = @transform_4, window_bounds = array<i64: 64, 1>}, {pipeline_mode = #tpu.pipeline_mode<synchronous>, transform_indices = @transform_5, window_bounds = array<i64: 1, 64>}, {pipeline_mode = #tpu.pipeline_mode<synchronous>, transform_indices = @transform_6, window_bounds = array<i64: 1, 1>}, {transform_indices = @transform_7, window_bounds = array<i64: 1, 128>}]} {
    %c0 = arith.constant 0 : index
    %c0_0 = arith.constant 0 : index
    %0 = vector.load %arg1[%c0, %c0_0] : memref<8x128xf32, #tpu.memory_space<vmem>>, vector<8x128xf32>
    %c0_1 = arith.constant 0 : index
    %c0_2 = arith.constant 0 : index
    %1 = vector.load %arg2[%c0_1, %c0_2] : memref<64x8xf32, #tpu.memory_space<vmem>>, vector<64x8xf32>
    %cst = arith.constant dense<0.000000e+00> : vector<64x128xf32>
    %2 = tpu.matmul %1, %0, %cst {dimension_numbers = #tpu.dot_dimension_numbers<[1], [0], [0], [1], [0, 0, 1, 1], [], []>} : vector<64x8xf32>, vector<8x128xf32>, vector<64x128xf32> -> vector<64x128xf32>
    %c0_3 = arith.constant 0 : index
    %c0_4 = arith.constant 0 : index
    %3 = vector.load %arg3[%c0_3, %c0_4] : memref<64x1xf32, #tpu.memory_space<vmem>>, vector<64x1xf32>
    %4 = vector.broadcast %3 : vector<64x1xf32> to vector<64x128xf32>
    %5 = arith.addf %2, %4 : vector<64x128xf32>
    %cst_5 = arith.constant 0.00999999977 : f32
    %6 = vector.broadcast %cst_5 : f32 to vector<64x128xf32>
    %7 = arith.mulf %6, %5 : vector<64x128xf32>
    %8 = arith.maximumf %5, %7 : vector<64x128xf32>
    %c0_6 = arith.constant 0 : index
    %c0_7 = arith.constant 0 : index
    %9 = vector.load %arg4[%c0_6, %c0_7] : memref<64x64xf32, #tpu.memory_space<vmem>>, vector<64x64xf32>
    %cst_8 = arith.constant dense<0.000000e+00> : vector<64x128xf32>
    %10 = tpu.matmul %9, %8, %cst_8 {dimension_numbers = #tpu.dot_dimension_numbers<[1], [0], [0], [1], [0, 0, 1, 1], [], []>} : vector<64x64xf32>, vector<64x128xf32>, vector<64x128xf32> -> vector<64x128xf32>
    %c0_9 = arith.constant 0 : index
    %c0_10 = arith.constant 0 : index
    %11 = vector.load %arg5[%c0_9, %c0_10] : memref<64x1xf32, #tpu.memory_space<vmem>>, vector<64x1xf32>
    %12 = vector.broadcast %11 : vector<64x1xf32> to vector<64x128xf32>
    %13 = arith.addf %10, %12 : vector<64x128xf32>
    %cst_11 = arith.constant 0.00999999977 : f32
    %14 = vector.broadcast %cst_11 : f32 to vector<64x128xf32>
    %15 = arith.mulf %14, %13 : vector<64x128xf32>
    %16 = arith.maximumf %13, %15 : vector<64x128xf32>
    %c0_12 = arith.constant 0 : index
    %c0_13 = arith.constant 0 : index
    %17 = vector.load %arg6[%c0_12, %c0_13] : memref<1x64xf32, #tpu.memory_space<vmem>>, vector<1x64xf32>
    %cst_14 = arith.constant dense<0.000000e+00> : vector<1x128xf32>
    %18 = tpu.matmul %17, %16, %cst_14 {dimension_numbers = #tpu.dot_dimension_numbers<[1], [0], [0], [1], [0, 0, 1, 1], [], []>} : vector<1x64xf32>, vector<64x128xf32>, vector<1x128xf32> -> vector<1x128xf32>
    %c0_15 = arith.constant 0 : index
    %c0_16 = arith.constant 0 : index
    %19 = vector.load %arg7[%c0_15, %c0_16] : memref<1x1xf32, #tpu.memory_space<vmem>>, vector<1x1xf32>
    %20 = vector.broadcast %19 : vector<1x1xf32> to vector<1x128xf32>
    %21 = arith.addf %18, %20 : vector<1x128xf32>
    %c0_17 = arith.constant 0 : index
    %c0_18 = arith.constant 0 : index
    %22 = vector.load %arg8[%c0_17, %c0_18] : memref<1x128xf32, #tpu.memory_space<vmem>>, vector<1x128xf32>
    tpu.vector_store %arg8[%c0_17, %c0_18], %21 {strides = array<i32>} : memref<1x128xf32, #tpu.memory_space<vmem>>, vector<1x128xf32>,
    return
  }
  func.func @transform_0(%arg0: i32) -> (i32, i32) {
    %c0_i32 = arith.constant 0 : i32
    %c0_i32_0 = arith.constant 0 : i32
    return %c0_i32, %arg0 : i32, i32
  }
  func.func @transform_1(%arg0: i32) -> (i32, i32) {
    %c0_i32 = arith.constant 0 : i32
    %c0_i32_0 = arith.constant 0 : i32
    %c0_i32_1 = arith.constant 0 : i32
    return %c0_i32, %c0_i32_0 : i32, i32
  }
  func.func @transform_2(%arg0: i32) -> (i32, i32) {
    %c0_i32 = arith.constant 0 : i32
    %c0_i32_0 = arith.constant 0 : i32
    %c0_i32_1 = arith.constant 0 : i32
    return %c0_i32, %c0_i32_0 : i32, i32
  }
  func.func @transform_3(%arg0: i32) -> (i32, i32) {
    %c0_i32 = arith.constant 0 : i32
    %c0_i32_0 = arith.constant 0 : i32
    %c0_i32_1 = arith.constant 0 : i32
    return %c0_i32, %c0_i32_0 : i32, i32
  }
  func.func @transform_4(%arg0: i32) -> (i32, i32) {
    %c0_i32 = arith.constant 0 : i32
    %c0_i32_0 = arith.constant 0 : i32
    %c0_i32_1 = arith.constant 0 : i32
    return %c0_i32, %c0_i32_0 : i32, i32
  }
  func.func @transform_5(%arg0: i32) -> (i32, i32) {
    %c0_i32 = arith.constant 0 : i32
    %c0_i32_0 = arith.constant 0 : i32
    %c0_i32_1 = arith.constant 0 : i32
    return %c0_i32, %c0_i32_0 : i32, i32
  }
  func.func @transform_6(%arg0: i32) -> (i32, i32) {
    %c0_i32 = arith.constant 0 : i32
    %c0_i32_0 = arith.constant 0 : i32
    %c0_i32_1 = arith.constant 0 : i32
    return %c0_i32, %c0_i32_0 : i32, i32
  }
  func.func @transform_7(%arg0: i32) -> (i32, i32) {
    %c0_i32 = arith.constant 0 : i32
    %c0_i32_0 = arith.constant 0 : i32
    return %c0_i32, %arg0 : i32, i32
  }
}

</mosaic_0001>

<bundles_post_ra>
// kernel: tpu_custom_call.1
= control target key start
LH: loop header
LB: loop body
LE: loop exit
PB: predicated region body
PF: predicated region fallthrough
CT: control target
= control target key end

     0   :  { %s578_s0 = inlined_call_operand.vmem [shape: f32[8,128], index: 0, kind: input, shape index: {}]   ;;  %s579_s1 = inlined_call_operand.vmem [shape: f32[64,8], index: 1, kind: input, shape index: {}]   ;;  %s580_s2 = inlined_call_operand.vmem [shape: f32[64,1], index: 2, kind: input, shape index: {}]   ;;  %s581_s3 = inlined_call_operand.vmem [shape: f32[64,64], index: 3, kind: input, shape index: {}]   ;;  %s582_s4 = inlined_call_operand.vmem [shape: f32[64,1], index: 4, kind: input, shape index: {}]   ;;  %s583_s5 = inlined_call_operand.vmem [shape: f32[1,64], index: 5, kind: input, shape index: {}]   ;;  %s584_s6 = inlined_call_operand.<no memory space> [shape: f32[1,1], index: 6, kind: input, shape index: {}]   ;;  %s585_s7 = inlined_call_operand.hbm [shape: f32[1,128], index: 7, kind: output, shape index: {}]  }
   0x1   :  { %v12_v0 = vstv %s584_s6 }
   0x2   :  { %13 = vst [vmem:[#allocation2] sm:$0x1] %v12_v0 }
   0x3   :  { %v29_v1 = vld [vmem:[%s578_s0] sm:$0xff]  ;;  %v43_v2 = vld [vmem:[%s580_s2 + $0x28] sm:$0xff]  ;;  %vm86_vm0 = vcmask 64512   ;;  %v411_v4 = vmov 0   ;;  %v45_v5 = vld [vmem:[%s580_s2 + $0x38] sm:$0xff] }
   0x4   :  { %v30_v3 = vld [vmem:[%s579_s1] sm:$0xff]  ;;  %383 = vset.pattern.permute.xlu1 %v411_v4  ;;  %126 = vmatpush.msra.mxu0 %v29_v1  ;;  %v36_v6 = vld [vmem:[%s579_s1 + $0x30] sm:$0xff] }
   0x5   :  { %382 = vset.pattern.permute.xlu0 %v411_v4  ;;  %73 = vperm.xlu1 %383, %v43_v2  }
   0x6   :  { %354 = vmatmul.msk.f32.vlgmr.msra.gmra.mxu0 %vm86_vm0, %v30_v3  ;;  %83 = vperm.xlu0 %382, %v45_v5  }
   0x7   :  { %371 = vmatpush.msra.mxu2 %v29_v1  ;;  %384 = vset.pattern.permute.xlu2 %v411_v4 }
   0x8   :  { %360 = vmatmul.msk.f32.vlgmr.msra.gmra.mxu2 %vm86_vm0, %v36_v6 }
   0x9   :  { %14 = vsyncpa [#allocation4], 0  ;;  %v42_v7 = vld [vmem:[%s580_s2 + $0x20] sm:$0xff]  ;;  %v31_v8 = vld [vmem:[%s579_s1 + $0x8] sm:$0xff]  ;;  %vm224_vm1 = vcmask 523264   ;;  %s412_s14 = smov [#allocation3]  }
   0xa   :  { %v44_v9 = vld [vmem:[%s580_s2 + $0x30] sm:$0xff]  ;;  %v37_v10 = vld [vmem:[%s579_s1 + $0x38] sm:$0xff]  ;;  %v38_v12 = vld [vmem:[%s580_s2] sm:$0xff]  ;;  %s343_s15 = sshll.u32 %s412_s14, 4  ;;  %s345_s18 = sshll.u32 %s585_s7, 4  ;;  %s344_s15 = int_to_ptr.vmem [resolvable:$true] %s343_s15  ;;  %s346_s18 = int_to_ptr.hbm [resolvable:$true] %s345_s18 }
   0xb   :  { %v41_v11 = vld [vmem:[%s580_s2 + $0x18] sm:$0xff]  ;;  %v32_v13 = vld [vmem:[%s579_s1 + $0x10] sm:$0xff]  ;;  %v39_v14 = vld [vmem:[%s580_s2 + $0x8] sm:$0xff] }
   0xc   :  { %63 = vperm.xlu2 %384, %v41_v11   ;;  %v40_v15 = vld [vmem:[%s580_s2 + $0x10] sm:$0xff]  ;;  %v181_v16 = vld [vmem:[%s582_s4 + $0x28] sm:$0xff]  ;;  %v33_v17 = vld [vmem:[%s579_s1 + $0x18] sm:$0xff] }
   0xd   :  { %68 = vperm.xlu1 %383, %v42_v7   ;;  %v182_v18 = vld [vmem:[%s582_s4 + $0x30] sm:$0xff]  ;;  %v183_v19 = vld [vmem:[%s582_s4 + $0x38] sm:$0xff]  ;;  %v34_v21 = vld [vmem:[%s579_s1 + $0x20] sm:$0xff] }
   0xe   :  { %355 = vmatmul.msk.f32.gmra.mxu0 %vm86_vm0, %v31_v8  ;;  %78 = vperm.xlu0 %382, %v44_v9   ;;  %v178_v20 = vld [vmem:[%s582_s4 + $0x10] sm:$0xff]  ;;  %v179_v22 = vld [vmem:[%s582_s4 + $0x18] sm:$0xff]  ;;  %v180_v23 = vld [vmem:[%s582_s4 + $0x20] sm:$0xff] }
   0xf   :  { %v307_v24 = vld [vmem:[#allocation2] sm:$0x1]  ;;  %v35_v25 = vld [vmem:[%s579_s1 + $0x28] sm:$0xff]  ;;  %v170_v8 = vld [vmem:[%s581_s3 + $0x10] sm:$0xff] }
  0x10   :  { %361 = vmatmul.msk.f32.gmra.mxu2 %vm86_vm0, %v37_v10  ;;  %v176_v26 = vld [vmem:[%s582_s4] sm:$0xff]  ;;  %v177_v27 = vld [vmem:[%s582_s4 + $0x8] sm:$0xff]  ;;  %v174_v9 = vld [vmem:[%s581_s3 + $0x30] sm:$0xff] }
  0x11   :  { %v168_v4 = vld [vmem:[%s581_s3] sm:$0xff]  ;;  %v169_v6 = vld [vmem:[%s581_s3 + $0x8] sm:$0xff]  ;;  %v171_v10 = vld [vmem:[%s581_s3 + $0x18] sm:$0xff] }
  0x12   :  { %v172_v5 = vld [vmem:[%s581_s3 + $0x20] sm:$0xff]  ;;  %v173_v7 = vld [vmem:[%s581_s3 + $0x28] sm:$0xff]  ;;  %v175_v11 = vld [vmem:[%s581_s3 + $0x38] sm:$0xff] }
  0x14   :  { %58 = vperm.xlu2 %384, %v40_v15  }
  0x15   :  { %48 = vperm.xlu1 %383, %v38_v12  }
  0x16   :  { %356 = vmatmul.msk.f32.gmra.mxu0 %vm86_vm0, %v32_v13  ;;  %53 = vperm.xlu0 %382, %v39_v14  }
  0x1c   :  { %221 = vperm.xlu2 %384, %v183_v19  }
  0x1d   :  { %211 = vperm.xlu1 %383, %v181_v16  }
  0x1e   :  { %357 = vmatmul.msk.f32.gmra.mxu0 %vm86_vm0, %v33_v17  ;;  %216 = vperm.xlu0 %382, %v182_v18  }
  0x24   :  { %206 = vperm.xlu2 %384, %v180_v23  }
  0x25   :  { %196 = vperm.xlu1 %383, %v178_v20  }
  0x26   :  { %358 = vmatmul.msk.f32.gmra.mxu0 %vm86_vm0, %v34_v21  ;;  %201 = vperm.xlu0 %382, %v179_v22  }
  0x2c   :  { %191 = vperm.xlu2 %384, %v177_v27  }
  0x2d   :  { %310 = vperm.xlu1 %383, %v307_v24  }
  0x2e   :  { %359 = vmatmul.msk.f32.gmra.mxu0 %vm86_vm0, %v35_v25  ;;  %186 = vperm.xlu0 %382, %v176_v26  }
  0x66   :  { %v64_v43 = vpop.permute.xlu2 %63 }
  0x6e   :  { %v59_v50 = vpop.permute.xlu2 %58 }
  0x76   :  { %v222_v16 = vpop.permute.xlu2 %221 }
  0x77   :  { %v74_v41 = vpop.permute.xlu1 %73 }
  0x78   :  { %v84_v29 = vpop.permute.xlu0 %83 }
  0x7e   :  { %v207_v21 = vpop.permute.xlu2 %206 }
  0x7f   :  { %v69_v45 = vpop.permute.xlu1 %68 }
  0x80   :  { %v79_v32 = vpop.permute.xlu0 %78 }
  0x83   :  { %v128_v28 = vpop.f32.mrf.mxu0 }
  0x87   :  { %v49_v54 = vpop.permute.xlu1 %48 }
  0x88   :  { %v54_v55 = vpop.permute.xlu0 %53  ;;  %v129_v59 = vadd.f32 %v128_v28, %v49_v54 }
  0x8a   :  { %v152_v0 = vmul.f32 0.01, %v129_v59 }
  0x8b   :  { %v131_v30 = vpop.f32.mrf.mxu0  ;;  %v146_v31 = vpop.f32.mrf.mxu2 }
  0x8c   :  { %v147_v33 = vadd.f32 %v146_v31, %v79_v32  ;;  %v132_v56 = vadd.f32 %v131_v30, %v54_v55  ;;  %v160_v3 = vmax.f32 %v129_v59, %v152_v0 }
  0x8e   :  { %v158_v36 = vmul.f32 0.01, %v147_v33  ;;  %v153_v62 = vmul.f32 0.01, %v132_v56 }
  0x8f   :  { %v212_v20 = vpop.permute.xlu1 %211 }
  0x90   :  { %v166_v40 = vmax.f32 %v147_v33, %v158_v36  ;;  %v161_v2 = vmax.f32 %v132_v56, %v153_v62  ;;  %v217_v17 = vpop.permute.xlu0 %216 }
  0x93   :  { %v134_v34 = vpop.f32.mrf.mxu0  ;;  %v149_v35 = vpop.f32.mrf.mxu2 }
  0x94   :  { %v150_v37 = vadd.f32 %v149_v35, %v84_v29  ;;  %v135_v51 = vadd.f32 %v134_v34, %v59_v50 }
  0x96   :  { %v159_v38 = vmul.f32 0.01, %v150_v37  ;;  %v154_v60 = vmul.f32 0.01, %v135_v51 }
  0x97   :  { %v197_v34 = vpop.permute.xlu1 %196 }
  0x98   :  { %v167_v39 = vmax.f32 %v150_v37, %v159_v38  ;;  %v162_v1 = vmax.f32 %v135_v51, %v154_v60  ;;  %v202_v23 = vpop.permute.xlu0 %201  ;;  %v192_v38 = vpop.permute.xlu2 %191 }
  0x9a   :  { %257 = vmatpush.msra.mxu1 %v167_v39  ;;  %372 = vmatpush.msra.mxu3 %v167_v39 }
  0x9b   :  { %v137_v42 = vpop.f32.mrf.mxu0 }
  0x9c   :  { %258 = vmatpush.msra.mxu1 %v166_v40  ;;  %373 = vmatpush.msra.mxu3 %v166_v40  ;;  %v138_v48 = vadd.f32 %v137_v42, %v64_v43 }
  0x9e   :  { %v155_v57 = vmul.f32 0.01, %v138_v48 }
  0xa0   :  { %v163_v63 = vmax.f32 %v138_v48, %v155_v57  ;;  %v187_v42 = vpop.permute.xlu0 %186 }
  0xa3   :  { %v140_v44 = vpop.f32.mrf.mxu0 }
  0xa4   :  { %v141_v46 = vadd.f32 %v140_v44, %v69_v45 }
  0xa6   :  { %v156_v52 = vmul.f32 0.01, %v141_v46 }
  0xa8   :  { %v164_v61 = vmax.f32 %v141_v46, %v156_v52  ;;  %v306_v52 = vld [vmem:[%s583_s5] sm:$0x1] }
  0xab   :  { %v143_v47 = vpop.f32.mrf.mxu0 }
  0xac   :  { %v144_v49 = vadd.f32 %v143_v47, %v74_v41 }
  0xae   :  { %v157_v53 = vmul.f32 0.01, %v144_v49 }
  0xb0   :  { %v165_v58 = vmax.f32 %v144_v49, %v157_v53  ;;  %v311_v53 = vpop.permute.xlu1 %310 }
  0xb1   :  { %v313_v54 = vperm.slane %v311_v53, 0 }
  0xb2   :  { %259 = vmatpush.msra.mxu1 %v165_v58  ;;  %374 = vmatpush.msra.mxu3 %v165_v58 }
  0xb4   :  { %260 = vmatpush.msra.mxu1 %v164_v61  ;;  %375 = vmatpush.msra.mxu3 %v164_v61 }
  0xb6   :  { %261 = vmatpush.msra.mxu1 %v163_v63  ;;  %376 = vmatpush.msra.mxu3 %v163_v63 }
  0xb8   :  { %262 = vmatpush.msra.mxu1 %v162_v1  ;;  %377 = vmatpush.msra.mxu3 %v162_v1 }
  0xba   :  { %263 = vmatpush.msra.mxu1 %v161_v2  ;;  %378 = vmatpush.msra.mxu3 %v161_v2 }
  0xbc   :  { %264 = vmatpush.msra.mxu1 %v160_v3  ;;  %379 = vmatpush.msra.mxu3 %v160_v3 }
  0xbd   :  { %362 = vmatmul.msk.f32.vlgmr.msra.gmra.mxu1 %vm224_vm1, %v168_v4  ;;  %366 = vmatmul.msk.f32.vlgmr.msra.gmra.mxu3 %vm224_vm1, %v172_v5 }
  0xc5   :  { %363 = vmatmul.msk.f32.gmra.mxu1 %vm224_vm1, %v169_v6  ;;  %367 = vmatmul.msk.f32.gmra.mxu3 %vm224_vm1, %v173_v7 }
  0xcd   :  { %364 = vmatmul.msk.f32.gmra.mxu1 %vm224_vm1, %v170_v8  ;;  %368 = vmatmul.msk.f32.gmra.mxu3 %vm224_vm1, %v174_v9 }
  0xd5   :  { %365 = vmatmul.msk.f32.gmra.mxu1 %vm224_vm1, %v171_v10  ;;  %369 = vmatmul.msk.f32.gmra.mxu3 %vm224_vm1, %v175_v11 }
 0x13a   :  { %v266_v12 = vpop.f32.mrf.mxu1 }
 0x13b   :  { %v267_v43 = vadd.f32 %v266_v12, %v187_v42 }
 0x13d   :  { %v290_v48 = vmul.f32 0.01, %v267_v43 }
 0x13f   :  { %v298_v51 = vmax.f32 %v267_v43, %v290_v48 }
 0x140   :  { %v278_v13 = vpop.f32.mrf.mxu3 }
 0x141   :  { %v279_v28 = vadd.f32 %v278_v13, %v207_v21 }
 0x142   :  { %v269_v14 = vpop.f32.mrf.mxu1 }
 0x143   :  { %v294_v35 = vmul.f32 0.01, %v279_v28  ;;  %v270_v39 = vadd.f32 %v269_v14, %v192_v38 }
 0x145   :  { %v302_v45 = vmax.f32 %v279_v28, %v294_v35  ;;  %v291_v46 = vmul.f32 0.01, %v270_v39 }
 0x147   :  { %v299_v50 = vmax.f32 %v270_v39, %v291_v46 }
 0x148   :  { %v281_v15 = vpop.f32.mrf.mxu3 }
 0x149   :  { %v282_v25 = vadd.f32 %v281_v15, %v212_v20 }
 0x14a   :  { %v272_v18 = vpop.f32.mrf.mxu1 }
 0x14b   :  { %v295_v31 = vmul.f32 0.01, %v282_v25  ;;  %v273_v36 = vadd.f32 %v272_v18, %v197_v34 }
 0x14d   :  { %v303_v41 = vmax.f32 %v282_v25, %v295_v31  ;;  %v292_v44 = vmul.f32 0.01, %v273_v36 }
 0x14f   :  { %v300_v49 = vmax.f32 %v273_v36, %v292_v44 }
 0x150   :  { %v284_v19 = vpop.f32.mrf.mxu3 }
 0x151   :  { %v285_v22 = vadd.f32 %v284_v19, %v217_v17 }
 0x152   :  { %v275_v27 = vpop.f32.mrf.mxu1 }
 0x153   :  { %v296_v29 = vmul.f32 0.01, %v285_v22  ;;  %v276_v32 = vadd.f32 %v275_v27, %v202_v23 }
 0x155   :  { %v304_v37 = vmax.f32 %v285_v22, %v296_v29  ;;  %v293_v40 = vmul.f32 0.01, %v276_v32 }
 0x157   :  { %v301_v47 = vmax.f32 %v276_v32, %v293_v40 }
 0x158   :  { %v287_v24 = vpop.f32.mrf.mxu3 }
 0x159   :  { %v288_v26 = vadd.f32 %v287_v24, %v222_v16 }
 0x15b   :  { %v297_v30 = vmul.f32 0.01, %v288_v26 }
 0x15d   :  { %v305_v33 = vmax.f32 %v288_v26, %v297_v30 }
 0x15f   :  { %325 = vmatpush.msrb.mxu2 %v305_v33 }
 0x161   :  { %326 = vmatpush.msrb.mxu2 %v304_v37 }
 0x163   :  { %327 = vmatpush.msrb.mxu2 %v303_v41 }
 0x165   :  { %328 = vmatpush.msrb.mxu2 %v302_v45 }
 0x167   :  { %329 = vmatpush.msrb.mxu2 %v301_v47 }
 0x169   :  { %330 = vmatpush.msrb.mxu2 %v300_v49 }
 0x16b   :  { %331 = vmatpush.msrb.mxu2 %v299_v50 }
 0x16d   :  { %332 = vmatpush.msrb.mxu2 %v298_v51 }
 0x16e   :  { %370 = vmatmul.msk.f32.vlgmr.msrb.gmra.mxu2 %vm224_vm1, %v306_v52 }
 0x1f1   :  { %v334_v55 = vpop.f32.mrf.mxu2 }
 0x1f2   :  { %v335_v56 = vadd.f32 %v334_v55, %v313_v54 }
 0x1f4   :  { %337 = vst [vmem:[#allocation3] sm:$0x1] %v335_v56 }
 0x1f5   :  { %348 = dma.vmem_to_hbm [thread:$0]  %s344_s15, 16, %s346_s18, [#allocation4]  }
 0x1f6   :  { %409 = dma.done.wait [#allocation4], 16  }
 0x1f7   :  { %410 = vsyncadd [#allocation4], 4294967280 }
 0x1f8   :  { %353 = vsyncpa [#allocation4], 1 }

</bundles_post_ra>
